<compile_context>
chip_gen: v7x
topology: tpu7x:2x2x1
jax: 0.10.0
libtpu: 0.0.40
codegen_flags: <defaults>
</compile_context>

<pallas_src>
import functools

import jax
import jax.numpy as jnp
from jax.experimental import pallas as pl
from jax.experimental.pallas import tpu as pltpu

_LANE = 128


# (in, out) feature sizes of the 10 Linear layers of NeuralNetwork(input, output)
def _layer_dims(input_size, output_size):
    return [
        (input_size, 128),
        (128, 256),
        (256, 256),
        (256, 256),
        (256, 256),
        (256, 256),
        (256, 128),
        (128, 32),
        (32, 8),
        (8, output_size),
    ]


def _round_up(n, m):
    return ((n + m - 1) // m) * m


def _num_tensorcores():
    """Best-effort detection: v7x has 2 TensorCores/chip, v5e/v6e have 1."""
    try:
        kind = str(jax.devices()[0].device_kind).lower()
    except Exception:
        return 1
    return 2 if "v7" in kind else 1


def _choose_batch_tile(batch, requested, num_cores):
    """Multiple of 8, <= padded batch; force >=2 grid steps only on 2-TC parts."""
    tb = max(8, min(requested, _round_up(batch, 8)))
    tb = (tb // 8) * 8
    if num_cores >= 2 and batch >= 16 and pl.cdiv(batch, tb) < 2:
        # split across the two TensorCores (the grid axis is "parallel")
        tb = max(8, _round_up((batch + 1) // 2, 8))
    return tb


def _mlp_kernel(*refs, layer_meta, num_w_groups):
    # refs = (x_ref, w_group_0, ..., w_group_{G-1}, bias_ref, out_ref)
    x_ref = refs[0]
    w_refs = refs[1:1 + num_w_groups]
    b_ref = refs[1 + num_w_groups]
    out_ref = refs[2 + num_w_groups]

    h = x_ref[...]  # bf16 [TB, in_pad]
    n = len(layer_meta)
    for l, (gi, si, boff, outp) in enumerate(layer_meta):
        w = w_refs[gi][si]                    # bf16 [in_pad_l, out_pad_l] (static index)
        b = b_ref[:, boff:boff + outp]        # f32  [1, out_pad_l] (static, 128-aligned)
        acc = jnp.dot(h, w, preferred_element_type=jnp.float32) + b
        if l != n - 1:
            # ReLU fused with the bf16 downcast: spilled activations are bf16.
            h = jnp.maximum(acc, 0.0).astype(jnp.bfloat16)
        else:
            out_ref[...] = acc.astype(out_ref.dtype)


def _pack_params(weights, biases):
    """Pad to 128-multiples, cast weights to bf16, stack by shape, concat biases."""
    w_pad, out_pads = [], []
    for w in weights:
        fin, fout = w.shape
        fin_p, fout_p = _round_up(fin, _LANE), _round_up(fout, _LANE)
        wp = jnp.pad(w.astype(jnp.float32),
                     ((0, fin_p - fin), (0, fout_p - fout))).astype(jnp.bfloat16)
        w_pad.append(wp)
        out_pads.append(fout_p)

    # group layers by padded weight shape (order of first appearance)
    groups, group_order = {}, []
    for l, wp in enumerate(w_pad):
        key = wp.shape
        if key not in groups:
            groups[key] = []
            group_order.append(key)
        groups[key].append(l)

    # bias offsets into the single concatenated bias buffer (all 128-aligned)
    b_offsets, off = [], 0
    for op in out_pads:
        b_offsets.append(off)
        off += op

    stacked = []
    layer_meta = [None] * len(weights)
    for gi, key in enumerate(group_order):
        idxs = groups[key]
        stacked.append(jnp.stack([w_pad[l] for l in idxs], axis=0))
        for si, l in enumerate(idxs):
            layer_meta[l] = (gi, si, b_offsets[l], out_pads[l])

    b_parts = []
    for b, op in zip(biases, out_pads):
        bf = b.astype(jnp.float32).reshape(1, -1)
        b_parts.append(jnp.pad(bf, ((0, 0), (0, op - bf.shape[1]))))
    b_cat = jnp.concatenate(b_parts, axis=1)  # [1, sum(out_pads)] f32

    return stacked, b_cat, tuple(layer_meta), out_pads[-1]


def neural_network_forward(x, weights, biases, *, batch_tile=256):
    """10-layer MLP forward pass as a single fused Pallas TPU kernel.

    x:        [B, input_size] float32
    weights:  list of [in_l, out_l] float32 arrays (transposed vs. torch)
    biases:   list of [1, out_l] float32 arrays
    """
    B, in_features = x.shape
    out_features = weights[-1].shape[1]
    in_pad = _round_up(in_features, _LANE)

    # bf16 input: it is only ever a bf16 matmul operand inside the kernel.
    x_pad = jnp.pad(x.astype(jnp.float32),
                    ((0, 0), (0, in_pad - in_features))).astype(jnp.bfloat16)

    stacked_w, b_cat, layer_meta, out_pad = _pack_params(weights, biases)
    num_w_groups = len(stacked_w)

    tb = _choose_batch_tile(B, batch_tile, _num_tensorcores())
    grid = (pl.cdiv(B, tb),)

    in_specs = [pl.BlockSpec((tb, in_pad), lambda i: (i, 0))]
    for sw in stacked_w:
        # Constant index_map -> weights stay resident in VMEM across grid steps.
        in_specs.append(pl.BlockSpec(sw.shape, lambda i: (0, 0, 0)))
    in_specs.append(pl.BlockSpec(b_cat.shape, lambda i: (0, 0)))

    out_spec = pl.BlockSpec((tb, out_pad), lambda i: (i, 0))

    flops = 2 * B * sum(s.shape[0] * s.shape[1] * s.shape[2] for s in stacked_w)
    bytes_accessed = (
        x_pad.size * 2
        + sum(s.size * 2 for s in stacked_w)
        + b_cat.size * 4
        + B * out_pad * 4
    )

    kernel = functools.partial(_mlp_kernel, layer_meta=layer_meta,
                               num_w_groups=num_w_groups)

    out_padded = pl.pallas_call(
        kernel,
        out_shape=jax.ShapeDtypeStruct((B, out_pad), jnp.float32),
        grid=grid,
        in_specs=in_specs,
        out_specs=out_spec,
        compiler_params=pltpu.CompilerParams(
            dimension_semantics=("parallel",),
            vmem_limit_bytes=8 * 1024 * 1024,
        ),
        cost_estimate=pl.CostEstimate(
            flops=flops, transcendentals=0, bytes_accessed=bytes_accessed),
    )(x_pad, *stacked_w, b_cat)

    # lane-dense kernel output; slice down to the real output width outside.
    return out_padded[:, :out_features]


def init_params(input_size, output_size, key):
    """Deterministic PyTorch-Linear-style init: U(-1/sqrt(fan_in), 1/sqrt(fan_in))."""
    weights, biases = [], []
    for (fan_in, fan_out) in _layer_dims(input_size, output_size):
        key, kw, kb = jax.random.split(key, 3)
        bound = 1.0 / jnp.sqrt(jnp.float32(fan_in))
        # stored as [in, out] (transpose of torch's [out, in]) so kernel does x @ W
        w = jax.random.uniform(kw, (fan_in, fan_out), jnp.float32, -bound, bound)
        b = jax.random.uniform(kb, (1, fan_out), jnp.float32, -bound, bound)
        weights.append(w)
        biases.append(b)
    return weights, biases


if __name__ == "__main__":
    input_size = 16
    output_size = 4
    batch = 8

    key = jax.random.PRNGKey(0)
    key, kx = jax.random.split(key)
    x = jax.random.normal(kx, (batch, input_size), jnp.float32)

    weights, biases = init_params(input_size, output_size, key)

    out = neural_network_forward(x, weights, biases)
    out = jax.block_until_ready(out)

    assert out.shape == (batch, output_size), out.shape

    # reference of the same graph with the same bf16-operand / f32-accumulate dots
    h = x.astype(jnp.bfloat16)
    for i, (w, b) in enumerate(zip(weights, biases)):
        acc = jnp.dot(h, w.astype(jnp.bfloat16),
                      preferred_element_type=jnp.float32) + b
        if i != len(weights) - 1:
            h = jnp.maximum(acc, 0.0).astype(jnp.bfloat16)
        else:
            ref = acc
    assert jnp.allclose(out, ref, rtol=2e-2, atol=2e-2), float(
        jnp.max(jnp.abs(out - ref)))

    print("KERNEL_OK")
</pallas_src>

<mosaic_0001>
module attributes {stable_mosaic.version = 11 : i64} {
  func.func @_mlp_kernel(%arg0: i32, %arg1: memref<8x128xbf16, #tpu.memory_space<vmem>>, %arg2: memref<4x128x128xbf16, #tpu.memory_space<vmem>>, %arg3: memref<1x128x256xbf16, #tpu.memory_space<vmem>>, %arg4: memref<4x256x256xbf16, #tpu.memory_space<vmem>>, %arg5: memref<1x256x128xbf16, #tpu.memory_space<vmem>>, %arg6: memref<1x1920xf32, #tpu.memory_space<vmem>>, %arg7: memref<8x128xf32, #tpu.memory_space<vmem>>) attributes {dimension_semantics = [#tpu.dimension_semantics<parallel>], iteration_bounds = array<i64: 1>, scalar_prefetch = 0 : i64, scratch_operands = 0 : i64, tpu.core_type = #tpu.core_type<tc>, window_params = [{transform_indices = @transform_0, window_bounds = array<i64: 8, 128>}, {pipeline_mode = #tpu.pipeline_mode<synchronous>, transform_indices = @transform_1, window_bounds = array<i64: 4, 128, 128>}, {pipeline_mode = #tpu.pipeline_mode<synchronous>, transform_indices = @transform_2, window_bounds = array<i64: 1, 128, 256>}, {pipeline_mode = #tpu.pipeline_mode<synchronous>, transform_indices = @transform_3, window_bounds = array<i64: 4, 256, 256>}, {pipeline_mode = #tpu.pipeline_mode<synchronous>, transform_indices = @transform_4, window_bounds = array<i64: 1, 256, 128>}, {pipeline_mode = #tpu.pipeline_mode<synchronous>, transform_indices = @transform_5, window_bounds = array<i64: 1, 1920>}, {transform_indices = @transform_6, window_bounds = array<i64: 8, 128>}]} {
    %c0 = arith.constant 0 : index
    %c0_0 = arith.constant 0 : index
    %0 = vector.load %arg1[%c0, %c0_0] : memref<8x128xbf16, #tpu.memory_space<vmem>>, vector<8x128xbf16>
    %c0_1 = arith.constant 0 : index
    %c0_2 = arith.constant 0 : index
    %c0_3 = arith.constant 0 : index
    %1 = vector.load %arg2[%c0_1, %c0_2, %c0_3] : memref<4x128x128xbf16, #tpu.memory_space<vmem>>, vector<1x128x128xbf16>
    %2 = vector.shape_cast %1 : vector<1x128x128xbf16> to vector<128x128xbf16>
    %c0_4 = arith.constant 0 : index
    %c0_5 = arith.constant 0 : index
    %3 = vector.load %arg6[%c0_4, %c0_5] : memref<1x1920xf32, #tpu.memory_space<vmem>>, vector<1x128xf32>
    %cst = arith.constant dense<0.000000e+00> : vector<8x128xf32>
    %4 = tpu.matmul %0, %2, %cst {dimension_numbers = #tpu.dot_dimension_numbers<[1], [0], [0], [1], [0, 0, 1, 1], [], []>} : vector<8x128xbf16>, vector<128x128xbf16>, vector<8x128xf32> -> vector<8x128xf32>
    %5 = vector.broadcast %3 : vector<1x128xf32> to vector<8x128xf32>
    %6 = arith.addf %4, %5 : vector<8x128xf32>
    %cst_6 = arith.constant 0.000000e+00 : f32
    %7 = vector.broadcast %cst_6 : f32 to vector<8x128xf32>
    %8 = arith.maximumf %6, %7 : vector<8x128xf32>
    %9 = arith.truncf %8 : vector<8x128xf32> to vector<8x128xbf16>
    %c0_7 = arith.constant 0 : index
    %c0_8 = arith.constant 0 : index
    %c0_9 = arith.constant 0 : index
    %10 = vector.load %arg3[%c0_7, %c0_8, %c0_9] : memref<1x128x256xbf16, #tpu.memory_space<vmem>>, vector<1x128x256xbf16>
    %11 = vector.shape_cast %10 : vector<1x128x256xbf16> to vector<128x256xbf16>
    %c0_10 = arith.constant 0 : index
    %c128 = arith.constant 128 : index
    %12 = vector.load %arg6[%c0_10, %c128] : memref<1x1920xf32, #tpu.memory_space<vmem>>, vector<1x256xf32>
    %cst_11 = arith.constant dense<0.000000e+00> : vector<8x256xf32>
    %13 = tpu.matmul %9, %11, %cst_11 {dimension_numbers = #tpu.dot_dimension_numbers<[1], [0], [0], [1], [0, 0, 1, 1], [], []>} : vector<8x128xbf16>, vector<128x256xbf16>, vector<8x256xf32> -> vector<8x256xf32>
    %14 = vector.broadcast %12 : vector<1x256xf32> to vector<8x256xf32>
    %15 = arith.addf %13, %14 : vector<8x256xf32>
    %cst_12 = arith.constant 0.000000e+00 : f32
    %16 = vector.broadcast %cst_12 : f32 to vector<8x256xf32>
    %17 = arith.maximumf %15, %16 : vector<8x256xf32>
    %18 = arith.truncf %17 : vector<8x256xf32> to vector<8x256xbf16>
    %c0_13 = arith.constant 0 : index
    %c0_14 = arith.constant 0 : index
    %c0_15 = arith.constant 0 : index
    %19 = vector.load %arg4[%c0_13, %c0_14, %c0_15] : memref<4x256x256xbf16, #tpu.memory_space<vmem>>, vector<1x256x256xbf16>
    %20 = vector.shape_cast %19 : vector<1x256x256xbf16> to vector<256x256xbf16>
    %c0_16 = arith.constant 0 : index
    %c384 = arith.constant 384 : index
    %21 = vector.load %arg6[%c0_16, %c384] : memref<1x1920xf32, #tpu.memory_space<vmem>>, vector<1x256xf32>
    %cst_17 = arith.constant dense<0.000000e+00> : vector<8x256xf32>
    %22 = tpu.matmul %18, %20, %cst_17 {dimension_numbers = #tpu.dot_dimension_numbers<[1], [0], [0], [1], [0, 0, 1, 1], [], []>} : vector<8x256xbf16>, vector<256x256xbf16>, vector<8x256xf32> -> vector<8x256xf32>
    %23 = vector.broadcast %21 : vector<1x256xf32> to vector<8x256xf32>
    %24 = arith.addf %22, %23 : vector<8x256xf32>
    %cst_18 = arith.constant 0.000000e+00 : f32
    %25 = vector.broadcast %cst_18 : f32 to vector<8x256xf32>
    %26 = arith.maximumf %24, %25 : vector<8x256xf32>
    %27 = arith.truncf %26 : vector<8x256xf32> to vector<8x256xbf16>
    %c1 = arith.constant 1 : index
    %c0_19 = arith.constant 0 : index
    %c0_20 = arith.constant 0 : index
    %28 = vector.load %arg4[%c1, %c0_19, %c0_20] : memref<4x256x256xbf16, #tpu.memory_space<vmem>>, vector<1x256x256xbf16>
    %29 = vector.shape_cast %28 : vector<1x256x256xbf16> to vector<256x256xbf16>
    %c0_21 = arith.constant 0 : index
    %c640 = arith.constant 640 : index
    %30 = vector.load %arg6[%c0_21, %c640] : memref<1x1920xf32, #tpu.memory_space<vmem>>, vector<1x256xf32>
    %cst_22 = arith.constant dense<0.000000e+00> : vector<8x256xf32>
    %31 = tpu.matmul %27, %29, %cst_22 {dimension_numbers = #tpu.dot_dimension_numbers<[1], [0], [0], [1], [0, 0, 1, 1], [], []>} : vector<8x256xbf16>, vector<256x256xbf16>, vector<8x256xf32> -> vector<8x256xf32>
    %32 = vector.broadcast %30 : vector<1x256xf32> to vector<8x256xf32>
    %33 = arith.addf %31, %32 : vector<8x256xf32>
    %cst_23 = arith.constant 0.000000e+00 : f32
    %34 = vector.broadcast %cst_23 : f32 to vector<8x256xf32>
    %35 = arith.maximumf %33, %34 : vector<8x256xf32>
    %36 = arith.truncf %35 : vector<8x256xf32> to vector<8x256xbf16>
    %c2 = arith.constant 2 : index
    %c0_24 = arith.constant 0 : index
    %c0_25 = arith.constant 0 : index
    %37 = vector.load %arg4[%c2, %c0_24, %c0_25] : memref<4x256x256xbf16, #tpu.memory_space<vmem>>, vector<1x256x256xbf16>
    %38 = vector.shape_cast %37 : vector<1x256x256xbf16> to vector<256x256xbf16>
    %c0_26 = arith.constant 0 : index
    %c896 = arith.constant 896 : index
    %39 = vector.load %arg6[%c0_26, %c896] : memref<1x1920xf32, #tpu.memory_space<vmem>>, vector<1x256xf32>
    %cst_27 = arith.constant dense<0.000000e+00> : vector<8x256xf32>
    %40 = tpu.matmul %36, %38, %cst_27 {dimension_numbers = #tpu.dot_dimension_numbers<[1], [0], [0], [1], [0, 0, 1, 1], [], []>} : vector<8x256xbf16>, vector<256x256xbf16>, vector<8x256xf32> -> vector<8x256xf32>
    %41 = vector.broadcast %39 : vector<1x256xf32> to vector<8x256xf32>
    %42 = arith.addf %40, %41 : vector<8x256xf32>
    %cst_28 = arith.constant 0.000000e+00 : f32
    %43 = vector.broadcast %cst_28 : f32 to vector<8x256xf32>
    %44 = arith.maximumf %42, %43 : vector<8x256xf32>
    %45 = arith.truncf %44 : vector<8x256xf32> to vector<8x256xbf16>
    %c3 = arith.constant 3 : index
    %c0_29 = arith.constant 0 : index
    %c0_30 = arith.constant 0 : index
    %46 = vector.load %arg4[%c3, %c0_29, %c0_30] : memref<4x256x256xbf16, #tpu.memory_space<vmem>>, vector<1x256x256xbf16>
    %47 = vector.shape_cast %46 : vector<1x256x256xbf16> to vector<256x256xbf16>
    %c0_31 = arith.constant 0 : index
    %c1152 = arith.constant 1152 : index
    %48 = vector.load %arg6[%c0_31, %c1152] : memref<1x1920xf32, #tpu.memory_space<vmem>>, vector<1x256xf32>
    %cst_32 = arith.constant dense<0.000000e+00> : vector<8x256xf32>
    %49 = tpu.matmul %45, %47, %cst_32 {dimension_numbers = #tpu.dot_dimension_numbers<[1], [0], [0], [1], [0, 0, 1, 1], [], []>} : vector<8x256xbf16>, vector<256x256xbf16>, vector<8x256xf32> -> vector<8x256xf32>
    %50 = vector.broadcast %48 : vector<1x256xf32> to vector<8x256xf32>
    %51 = arith.addf %49, %50 : vector<8x256xf32>
    %cst_33 = arith.constant 0.000000e+00 : f32
    %52 = vector.broadcast %cst_33 : f32 to vector<8x256xf32>
    %53 = arith.maximumf %51, %52 : vector<8x256xf32>
    %54 = arith.truncf %53 : vector<8x256xf32> to vector<8x256xbf16>
    %c0_34 = arith.constant 0 : index
    %c0_35 = arith.constant 0 : index
    %c0_36 = arith.constant 0 : index
    %55 = vector.load %arg5[%c0_34, %c0_35, %c0_36] : memref<1x256x128xbf16, #tpu.memory_space<vmem>>, vector<1x256x128xbf16>
    %56 = vector.shape_cast %55 : vector<1x256x128xbf16> to vector<256x128xbf16>
    %c0_37 = arith.constant 0 : index
    %c1408 = arith.constant 1408 : index
    %57 = vector.load %arg6[%c0_37, %c1408] : memref<1x1920xf32, #tpu.memory_space<vmem>>, vector<1x128xf32>
    %cst_38 = arith.constant dense<0.000000e+00> : vector<8x128xf32>
    %58 = tpu.matmul %54, %56, %cst_38 {dimension_numbers = #tpu.dot_dimension_numbers<[1], [0], [0], [1], [0, 0, 1, 1], [], []>} : vector<8x256xbf16>, vector<256x128xbf16>, vector<8x128xf32> -> vector<8x128xf32>
    %59 = vector.broadcast %57 : vector<1x128xf32> to vector<8x128xf32>
    %60 = arith.addf %58, %59 : vector<8x128xf32>
    %cst_39 = arith.constant 0.000000e+00 : f32
    %61 = vector.broadcast %cst_39 : f32 to vector<8x128xf32>
    %62 = arith.maximumf %60, %61 : vector<8x128xf32>
    %63 = arith.truncf %62 : vector<8x128xf32> to vector<8x128xbf16>
    %c1_40 = arith.constant 1 : index
    %c0_41 = arith.constant 0 : index
    %c0_42 = arith.constant 0 : index
    %64 = vector.load %arg2[%c1_40, %c0_41, %c0_42] : memref<4x128x128xbf16, #tpu.memory_space<vmem>>, vector<1x128x128xbf16>
    %65 = vector.shape_cast %64 : vector<1x128x128xbf16> to vector<128x128xbf16>
    %c0_43 = arith.constant 0 : index
    %c1536 = arith.constant 1536 : index
    %66 = vector.load %arg6[%c0_43, %c1536] : memref<1x1920xf32, #tpu.memory_space<vmem>>, vector<1x128xf32>
    %cst_44 = arith.constant dense<0.000000e+00> : vector<8x128xf32>
    %67 = tpu.matmul %63, %65, %cst_44 {dimension_numbers = #tpu.dot_dimension_numbers<[1], [0], [0], [1], [0, 0, 1, 1], [], []>} : vector<8x128xbf16>, vector<128x128xbf16>, vector<8x128xf32> -> vector<8x128xf32>
    %68 = vector.broadcast %66 : vector<1x128xf32> to vector<8x128xf32>
    %69 = arith.addf %67, %68 : vector<8x128xf32>
    %cst_45 = arith.constant 0.000000e+00 : f32
    %70 = vector.broadcast %cst_45 : f32 to vector<8x128xf32>
    %71 = arith.maximumf %69, %70 : vector<8x128xf32>
    %72 = arith.truncf %71 : vector<8x128xf32> to vector<8x128xbf16>
    %c2_46 = arith.constant 2 : index
    %c0_47 = arith.constant 0 : index
    %c0_48 = arith.constant 0 : index
    %73 = vector.load %arg2[%c2_46, %c0_47, %c0_48] : memref<4x128x128xbf16, #tpu.memory_space<vmem>>, vector<1x128x128xbf16>
    %74 = vector.shape_cast %73 : vector<1x128x128xbf16> to vector<128x128xbf16>
    %c0_49 = arith.constant 0 : index
    %c1664 = arith.constant 1664 : index
    %75 = vector.load %arg6[%c0_49, %c1664] : memref<1x1920xf32, #tpu.memory_space<vmem>>, vector<1x128xf32>
    %cst_50 = arith.constant dense<0.000000e+00> : vector<8x128xf32>
    %76 = tpu.matmul %72, %74, %cst_50 {dimension_numbers = #tpu.dot_dimension_numbers<[1], [0], [0], [1], [0, 0, 1, 1], [], []>} : vector<8x128xbf16>, vector<128x128xbf16>, vector<8x128xf32> -> vector<8x128xf32>
    %77 = vector.broadcast %75 : vector<1x128xf32> to vector<8x128xf32>
    %78 = arith.addf %76, %77 : vector<8x128xf32>
    %cst_51 = arith.constant 0.000000e+00 : f32
    %79 = vector.broadcast %cst_51 : f32 to vector<8x128xf32>
    %80 = arith.maximumf %78, %79 : vector<8x128xf32>
    %81 = arith.truncf %80 : vector<8x128xf32> to vector<8x128xbf16>
    %c3_52 = arith.constant 3 : index
    %c0_53 = arith.constant 0 : index
    %c0_54 = arith.constant 0 : index
    %82 = vector.load %arg2[%c3_52, %c0_53, %c0_54] : memref<4x128x128xbf16, #tpu.memory_space<vmem>>, vector<1x128x128xbf16>
    %83 = vector.shape_cast %82 : vector<1x128x128xbf16> to vector<128x128xbf16>
    %c0_55 = arith.constant 0 : index
    %c1792 = arith.constant 1792 : index
    %84 = vector.load %arg6[%c0_55, %c1792] : memref<1x1920xf32, #tpu.memory_space<vmem>>, vector<1x128xf32>
    %cst_56 = arith.constant dense<0.000000e+00> : vector<8x128xf32>
    %85 = tpu.matmul %81, %83, %cst_56 {dimension_numbers = #tpu.dot_dimension_numbers<[1], [0], [0], [1], [0, 0, 1, 1], [], []>} : vector<8x128xbf16>, vector<128x128xbf16>, vector<8x128xf32> -> vector<8x128xf32>
    %86 = vector.broadcast %84 : vector<1x128xf32> to vector<8x128xf32>
    %87 = arith.addf %85, %86 : vector<8x128xf32>
    %c0_57 = arith.constant 0 : index
    %c0_58 = arith.constant 0 : index
    %88 = vector.load %arg7[%c0_57, %c0_58] : memref<8x128xf32, #tpu.memory_space<vmem>>, vector<8x128xf32>
    tpu.vector_store %arg7[%c0_57, %c0_58], %87 {strides = array<i32>} : memref<8x128xf32, #tpu.memory_space<vmem>>, vector<8x128xf32>,
    return
  }
  func.func @transform_0(%arg0: i32) -> (i32, i32) {
    %c0_i32 = arith.constant 0 : i32
    %c0_i32_0 = arith.constant 0 : i32
    return %arg0, %c0_i32 : i32, i32
  }
  func.func @transform_1(%arg0: i32) -> (i32, i32, i32) {
    %c0_i32 = arith.constant 0 : i32
    %c0_i32_0 = arith.constant 0 : i32
    %c0_i32_1 = arith.constant 0 : i32
    %c0_i32_2 = arith.constant 0 : i32
    return %c0_i32, %c0_i32_0, %c0_i32_1 : i32, i32, i32
  }
  func.func @transform_2(%arg0: i32) -> (i32, i32, i32) {
    %c0_i32 = arith.constant 0 : i32
    %c0_i32_0 = arith.constant 0 : i32
    %c0_i32_1 = arith.constant 0 : i32
    %c0_i32_2 = arith.constant 0 : i32
    return %c0_i32, %c0_i32_0, %c0_i32_1 : i32, i32, i32
  }
  func.func @transform_3(%arg0: i32) -> (i32, i32, i32) {
    %c0_i32 = arith.constant 0 : i32
    %c0_i32_0 = arith.constant 0 : i32
    %c0_i32_1 = arith.constant 0 : i32
    %c0_i32_2 = arith.constant 0 : i32
    return %c0_i32, %c0_i32_0, %c0_i32_1 : i32, i32, i32
  }
  func.func @transform_4(%arg0: i32) -> (i32, i32, i32) {
    %c0_i32 = arith.constant 0 : i32
    %c0_i32_0 = arith.constant 0 : i32
    %c0_i32_1 = arith.constant 0 : i32
    %c0_i32_2 = arith.constant 0 : i32
    return %c0_i32, %c0_i32_0, %c0_i32_1 : i32, i32, i32
  }
  func.func @transform_5(%arg0: i32) -> (i32, i32) {
    %c0_i32 = arith.constant 0 : i32
    %c0_i32_0 = arith.constant 0 : i32
    %c0_i32_1 = arith.constant 0 : i32
    return %c0_i32, %c0_i32_0 : i32, i32
  }
  func.func @transform_6(%arg0: i32) -> (i32, i32) {
    %c0_i32 = arith.constant 0 : i32
    %c0_i32_0 = arith.constant 0 : i32
    return %arg0, %c0_i32 : i32, i32
  }
}

</mosaic_0001>

<bundles_post_ra>
// kernel: tpu_custom_call.1
= control target key start
LH: loop header
LB: loop body
LE: loop exit
PB: predicated region body
PF: predicated region fallthrough
CT: control target
= control target key end

     0   :  { %11 = vsyncpa [#allocation3], 0  ;;  %s2860_s0 = inlined_call_operand.hbm [shape: bf16[8,128], index: 0, kind: input, shape index: {}]   ;;  %s2861_s1 = inlined_call_operand.hbm [shape: bf16[4,128,128], index: 1, kind: input, shape index: {}]   ;;  %s2862_s2 = inlined_call_operand.hbm [shape: bf16[1,128,256], index: 2, kind: input, shape index: {}]   ;;  %s2863_s3 = inlined_call_operand.hbm [shape: bf16[4,256,256], index: 3, kind: input, shape index: {}]   ;;  %s2864_s4 = inlined_call_operand.hbm [shape: bf16[1,256,128], index: 4, kind: input, shape index: {}]   ;;  %s2865_s5 = inlined_call_operand.vmem [shape: f32[1,1920], index: 5, kind: input, shape index: {}]   ;;  %s2866_s6 = inlined_call_operand.hbm [shape: f32[8,128], index: 6, kind: output, shape index: {}]  }
   0x1   :  { %12 = vsyncpa [#allocation6], 0 }
   0x2   :  { %13 = vsyncpa [#allocation9], 0 }
   0x3   :  { %14 = vsyncpa [#allocation4], 0  ;;  %s2644_s21 = smov [#allocation5]   ;;  %s2504_s25 = scalar_lea.hbm %s2861_s1, 4096 }
   0x4   :  { %s30_s22 = sshll.u32 %s2644_s21, 4  ;;  %p2505_p0 = scmp.ne.s32.totalorder %s2861_s1, %s2504_s25  ;;  %s31_s22 = int_to_ptr.vmem [resolvable:$true] %s30_s22 }
   0x5   :  { %p2508_p1 = scmp.lt.u32.totalorder %s2504_s25, %s2861_s1 }
   0x7   :  { %p2510_p2 = pnand %p2508_p1, %p2505_p0 }
   0x9   :  { %2513 = shalt.err (!%p2510_p2)
}
   0xa   :  { %s2514_s30 = scalar_lea.vmem %s31_s22, 4096  ;;  %p2519_p4 = scmp.lt.s32.totalorder %s31_s22, %s31_s22 }
   0xb   :  { %p2515_p3 = scmp.ne.s32.totalorder %s31_s22, %s2514_s30  ;;  %p2520_p5 = scmp.lt.s32.totalorder %s2514_s30, %s2514_s30 }
   0xd   :  { %p2521_p6 = por %p2520_p5, %p2519_p4 }
   0xf   :  { %p2522_p7 = pnand %p2521_p6, %p2515_p3 }
  0x11   :  { %2525 = shalt.err (!%p2522_p7)
}
  0x12   :  { %s2645_s7 = smov 64   ;;  %s2646_s8 = smov 4  }
  0x13   :  { %36 = dma.hbm_to_vmem [thread:$0]  %s2861_s1, 4096, %s31_s22, [#allocation6], %s2645_s7, %s2645_s7, %s2646_s8  }
  0x14   :  { %s2647_s11 = smov [#allocation8]   ;;  %s2648_s13 = smov [#allocation2]  }
  0x15   :  { %s54_s12 = sshll.u32 %s2647_s11, 4  ;;  %s21_s14 = sshll.u32 %s2648_s13, 4  ;;  %s55_s12 = int_to_ptr.vmem [resolvable:$true] %s54_s12  ;;  %s22_s14 = int_to_ptr.vmem [resolvable:$true] %s21_s14 }
  0x16   :  { %s2526_s17 = scalar_lea.hbm %s2863_s3, 16384 }
  0x17   :  { %p2527_p8 = scmp.ne.s32.totalorder %s2863_s3, %s2526_s17  ;;  %p2530_p9 = scmp.lt.u32.totalorder %s2526_s17, %s2863_s3 }
  0x19   :  { %p2532_p10 = pnand %p2530_p9, %p2527_p8 }
  0x1b   :  { %2535 = shalt.err (!%p2532_p10)
}
  0x1c   :  { %s2536_s1 = scalar_lea.vmem %s55_s12, 16384  ;;  %p2541_p12 = scmp.lt.s32.totalorder %s55_s12, %s55_s12 }
  0x1d   :  { %p2537_p11 = scmp.ne.s32.totalorder %s55_s12, %s2536_s1  ;;  %p2542_p13 = scmp.lt.s32.totalorder %s2536_s1, %s2536_s1 }
  0x1f   :  { %p2543_p0 = por %p2542_p13, %p2541_p12 }
  0x21   :  { %p2544_p1 = pnand %p2543_p0, %p2537_p11 }
  0x23   :  { %2547 = shalt.err (!%p2544_p1)
}
  0x24   :  { %s2649_s22 = smov 128   ;;  %s2650_s23 = smov 8  }
  0x25   :  { %60 = dma.hbm_to_vmem [thread:$0]  %s2863_s3, 16384, %s55_s12, [#allocation9], %s2649_s22, %s2649_s22, %s2650_s23  }
  0x26   :  { %s2548_s28 = scalar_lea.hbm %s2860_s0, 64 }
  0x27   :  { %p2549_p2 = scmp.ne.s32.totalorder %s2860_s0, %s2548_s28  ;;  %p2552_p3 = scmp.lt.u32.totalorder %s2548_s28, %s2860_s0 }
  0x29   :  { %p2554_p4 = pnand %p2552_p3, %p2549_p2 }
  0x2b   :  { %2557 = shalt.err (!%p2554_p4)
}
  0x2c   :  { %s2558_s11 = scalar_lea.vmem %s22_s14, 64  ;;  %p2563_p6 = scmp.lt.s32.totalorder %s22_s14, %s22_s14 }
  0x2d   :  { %p2559_p5 = scmp.ne.s32.totalorder %s22_s14, %s2558_s11  ;;  %p2564_p7 = scmp.lt.s32.totalorder %s2558_s11, %s2558_s11 }
  0x2f   :  { %p2565_p8 = por %p2564_p7, %p2563_p6 }
  0x31   :  { %p2566_p9 = pnand %p2565_p8, %p2559_p5 }
  0x33   :  { %2569 = shalt.err (!%p2566_p9)
}
  0x34   :  { %24 = dma.hbm_to_vmem [thread:$0]  %s2860_s0, 64, %s22_s14, [#allocation3]  }
  0x35   :  { %s2651_s13 = smov [#allocation7]   ;;  %s2652_s16 = smov [#allocation10]  }
  0x36   :  { %s42_s15 = sshll.u32 %s2651_s13, 4  ;;  %s66_s17 = sshll.u32 %s2652_s16, 4  ;;  %s43_s15 = int_to_ptr.vmem [resolvable:$true] %s42_s15  ;;  %s67_s17 = int_to_ptr.vmem [resolvable:$true] %s66_s17 }
  0x37   :  { %s2570_s20 = scalar_lea.hbm %s2862_s2, 2048 }
  0x38   :  { %p2571_p10 = scmp.ne.s32.totalorder %s2862_s2, %s2570_s20  ;;  %p2574_p11 = scmp.lt.u32.totalorder %s2570_s20, %s2862_s2 }
  0x3a   :  { %p2576_p12 = pnand %p2574_p11, %p2571_p10 }
  0x3c   :  { %2579 = shalt.err (!%p2576_p12)
}
  0x3d   :  { %s2580_s0 = scalar_lea.vmem %s43_s15, 2048  ;;  %p2585_p0 = scmp.lt.s32.totalorder %s43_s15, %s43_s15 }
  0x3e   :  { %p2581_p13 = scmp.ne.s32.totalorder %s43_s15, %s2580_s0  ;;  %p2586_p1 = scmp.lt.s32.totalorder %s2580_s0, %s2580_s0 }
  0x40   :  { %p2587_p2 = por %p2586_p1, %p2585_p0 }
  0x42   :  { %p2588_p3 = pnand %p2587_p2, %p2581_p13 }
  0x44   :  { %2591 = shalt.err (!%p2588_p3)
}
  0x45   :  { %48 = dma.hbm_to_vmem [thread:$0]  %s2862_s2, 2048, %s43_s15, [#allocation6], %s2649_s22, %s2649_s22, %s2650_s23  }
  0x46   :  { %s2592_s29 = scalar_lea.hbm %s2864_s4, 2048 }
  0x47   :  { %p2593_p4 = scmp.ne.s32.totalorder %s2864_s4, %s2592_s29  ;;  %p2596_p5 = scmp.lt.u32.totalorder %s2592_s29, %s2864_s4 }
  0x49   :  { %p2598_p6 = pnand %p2596_p5, %p2593_p4 }
  0x4b   :  { %2601 = shalt.err (!%p2598_p6)
}
  0x4c   :  { %s2602_s3 = scalar_lea.vmem %s67_s17, 2048  ;;  %p2607_p8 = scmp.lt.s32.totalorder %s67_s17, %s67_s17 }
  0x4d   :  { %p2603_p7 = scmp.ne.s32.totalorder %s67_s17, %s2602_s3  ;;  %p2608_p9 = scmp.lt.s32.totalorder %s2602_s3, %s2602_s3 }
  0x4f   :  { %p2609_p10 = por %p2608_p9, %p2607_p8 }
  0x51   :  { %p2610_p11 = pnand %p2609_p10, %p2603_p7 }
  0x53   :  { %2613 = shalt.err (!%p2610_p11)
}
  0x54   :  { %72 = dma.hbm_to_vmem [thread:$0]  %s2864_s4, 2048, %s67_s17, [#allocation9], %s2645_s7, %s2645_s7, %s2646_s8  }
  0x55   :  { %2636 = dma.done.wait [#allocation3], 64  }
  0x56   :  { %2637 = vsyncadd [#allocation3], 4294967232 }
  0x57   :  { %2638 = dma.done.wait [#allocation6], 6144  }
  0x58   :  { %2639 = vsyncadd [#allocation6], 4294961152 }
  0x59   :  { %2640 = dma.done.wait [#allocation9], 18432  }
  0x5a   :  { %2641 = vsyncadd [#allocation9], 4294948864  ;;  %v2653_v0 = vmov 0.0   ;;  %vm2654_vm0 = vmmov 0   ;;  %v2240_v1 = vld [vmem:[#allocation5] sm:$0xff]   ;;  %v2241_v2 = vld [vmem:[#allocation5 + $0x8] sm:$0xff]  }
  0x5b   :  { %2147 = vmatprep.subr.bf16.mxu0 %v2653_v0  ;;  %2163 = vmatprep.mubr.msk.bf16.mxu0 %vm2654_vm0, %v2653_v0  ;;  %v2242_v3 = vld [vmem:[#allocation5 + $0x10] sm:$0xff]   ;;  %v2248_v4 = vld [vmem:[#allocation7 + $0x4] ss:$8 sps:$4 sm:$0xff]   ;;  %v2250_v5 = vld [vmem:[#allocation7] ss:$8 sps:$4 sm:$0xff]   ;;  %v2655_v26 = vmov 0  }
  0x5c   :  { %2148 = vmatpush3.bf16.msra.mxu0 %v2240_v1  ;;  %v2243_v6 = vld [vmem:[#allocation5 + $0x18] sm:$0xff]   ;;  %313 = vmatprep.subr.bf16.mxu1 %v2248_v4  ;;  %v2254_v9 = vld [vmem:[#allocation7 + $0x24] ss:$8 sps:$4 sm:$0xff]   ;;  %v2256_v11 = vld [vmem:[#allocation7 + $0x20] ss:$8 sps:$4 sm:$0xff]   ;;  %s2656_s28 = smov [#allocation11]  }
  0x5d   :  { %2149 = vmatprep.subr.bf16.mxu0 %v2653_v0  ;;  %v2251_v7 = vld [vmem:[#allocation7 + $0x14] ss:$8 sps:$4 sm:$0xff]   ;;  %314 = vmatpush1.bf16.msra.mxu1 %v2250_v5  ;;  %v2253_v8 = vld [vmem:[#allocation7 + $0x10] ss:$8 sps:$4 sm:$0xff]   ;;  %v2244_v10 = vld [vmem:[#allocation5 + $0x20] sm:$0xff]   ;;  %s1881_s29 = sshll.u32 %s2656_s28, 4  ;;  %s1882_s29 = int_to_ptr.vmem [resolvable:$true] %s1881_s29 }
  0x5e   :  { %315 = vmatprep.subr.bf16.mxu1 %v2251_v7  ;;  %v2245_v12 = vld [vmem:[#allocation5 + $0x28] sm:$0xff]   ;;  %v2257_v13 = vld [vmem:[#allocation7 + $0x34] ss:$8 sps:$4 sm:$0xff]   ;;  %v2259_v14 = vld [vmem:[#allocation7 + $0x30] ss:$8 sps:$4 sm:$0xff]   ;;  %345 = vmatprep.mubr.bf16.mxu1 %v2655_v26  ;;  %s2614_s30 = scalar_lea.vmem %s1882_s29, 128  ;;  %p2619_p13 = scmp.lt.s32.totalorder %s1882_s29, %s1882_s29 }
  0x5f   :  { %v2260_v15 = vld [vmem:[#allocation7 + $0x44] ss:$8 sps:$4 sm:$0xff]   ;;  %v2246_v16 = vld [vmem:[#allocation5 + $0x30] sm:$0xff]   ;;  %v2262_v17 = vld [vmem:[#allocation7 + $0x40] ss:$8 sps:$4 sm:$0xff]   ;;  %p2615_p12 = scmp.ne.s32.totalorder %s1882_s29, %s2614_s30  ;;  %p2620_p0 = scmp.lt.s32.totalorder %s2614_s30, %s2614_s30 }
  0x60   :  { %2150 = vmatpush3.bf16.msra.mxu0 %v2241_v2  ;;  %v2263_v18 = vld [vmem:[#allocation7 + $0x54] ss:$8 sps:$4 sm:$0xff]   ;;  %v2265_v20 = vld [vmem:[#allocation7 + $0x50] ss:$8 sps:$4 sm:$0xff]   ;;  %v2266_v21 = vld [vmem:[#allocation7 + $0x64] ss:$8 sps:$4 sm:$0xff]  }
  0x61   :  { %2151 = vmatprep.subr.bf16.mxu0 %v2653_v0  ;;  %316 = vmatpush1.bf16.msra.mxu1 %v2253_v8  ;;  %v2247_v19 = vld [vmem:[#allocation5 + $0x38] sm:$0xff]   ;;  %v2268_v23 = vld [vmem:[#allocation7 + $0x60] ss:$8 sps:$4 sm:$0xff]   ;;  %v2274_v28 = vld [vmem:[#allocation8 + $0x4] ss:$8 sps:$4 sm:$0xff]   ;;  %p2621_p1 = por %p2620_p0, %p2619_p13 }
  0x62   :  { %317 = vmatprep.subr.bf16.mxu1 %v2254_v9  ;;  %v91_v22 = vld [vmem:[#allocation2] sm:$0xf]  ;;  %v2271_v25 = vld [vmem:[#allocation7 + $0x70] ss:$8 sps:$4 sm:$0xff]   ;;  %v2272_v27 = vld [vmem:[#allocation8] ss:$8 sps:$4 sm:$0xff]  }
  0x63   :  { %v2269_v24 = vld [vmem:[#allocation7 + $0x74] ss:$8 sps:$4 sm:$0xff]   ;;  %v2275_v30 = vld [vmem:[#allocation8 + $0x10] ss:$8 sps:$4 sm:$0xff]   ;;  %v2280_v31 = vld [vmem:[#allocation8 + $0x24] ss:$8 sps:$4 sm:$0xff]   ;;  %p2622_p2 = pnand %p2621_p1, %p2615_p12 }
  0x64   :  { %2152 = vmatpush3.bf16.msra.mxu0 %v2242_v3  ;;  %v2277_v29 = vld [vmem:[#allocation8 + $0x14] ss:$8 sps:$4 sm:$0xff]   ;;  %v2278_v32 = vld [vmem:[#allocation8 + $0x20] ss:$8 sps:$4 sm:$0xff]   ;;  %v2281_v34 = vld [vmem:[#allocation8 + $0x30] ss:$8 sps:$4 sm:$0xff]  }
  0x65   :  { %2153 = vmatprep.subr.bf16.mxu0 %v2653_v0  ;;  %318 = vmatpush1.bf16.msra.mxu1 %v2256_v11  ;;  %v2283_v33 = vld [vmem:[#allocation8 + $0x34] ss:$8 sps:$4 sm:$0xff]   ;;  %v2286_v35 = vld [vmem:[#allocation8 + $0x44] ss:$8 sps:$4 sm:$0xff]   ;;  %v2284_v36 = vld [vmem:[#allocation8 + $0x40] ss:$8 sps:$4 sm:$0xff]  }
  0x66   :  { %319 = vmatprep.subr.bf16.mxu1 %v2257_v13  ;;  %v2289_v37 = vld [vmem:[#allocation8 + $0x54] ss:$8 sps:$4 sm:$0xff]   ;;  %v2287_v38 = vld [vmem:[#allocation8 + $0x50] ss:$8 sps:$4 sm:$0xff]   ;;  %v2292_v39 = vld [vmem:[#allocation8 + $0x64] ss:$8 sps:$4 sm:$0xff]  }
  0x67   :  { %v2290_v40 = vld [vmem:[#allocation8 + $0x60] ss:$8 sps:$4 sm:$0xff]   ;;  %v2295_v41 = vld [vmem:[#allocation8 + $0x74] ss:$8 sps:$4 sm:$0xff]   ;;  %v2293_v42 = vld [vmem:[#allocation8 + $0x70] ss:$8 sps:$4 sm:$0xff]  }
  0x68   :  { %2154 = vmatpush3.bf16.msra.mxu0 %v2243_v6  ;;  %v2298_v43 = vld [vmem:[#allocation8 + $0x84] ss:$8 sps:$4 sm:$0xff]   ;;  %v2296_v44 = vld [vmem:[#allocation8 + $0x80] ss:$8 sps:$4 sm:$0xff]   ;;  %v2301_v45 = vld [vmem:[#allocation8 + $0x94] ss:$8 sps:$4 sm:$0xff]  }
  0x69   :  { %2155 = vmatprep.subr.bf16.mxu0 %v2653_v0  ;;  %320 = vmatpush1.bf16.msra.mxu1 %v2259_v14  ;;  %v2299_v46 = vld [vmem:[#allocation8 + $0x90] ss:$8 sps:$4 sm:$0xff]   ;;  %v2304_v47 = vld [vmem:[#allocation8 + $0xa4] ss:$8 sps:$4 sm:$0xff]   ;;  %v2302_v48 = vld [vmem:[#allocation8 + $0xa0] ss:$8 sps:$4 sm:$0xff]  }
  0x6a   :  { %321 = vmatprep.subr.bf16.mxu1 %v2260_v15  ;;  %v2307_v49 = vld [vmem:[#allocation8 + $0xb4] ss:$8 sps:$4 sm:$0xff]   ;;  %v2305_v50 = vld [vmem:[#allocation8 + $0xb0] ss:$8 sps:$4 sm:$0xff]   ;;  %v2310_v51 = vld [vmem:[#allocation8 + $0xc4] ss:$8 sps:$4 sm:$0xff]  }
  0x6b   :  { %v2308_v52 = vld [vmem:[#allocation8 + $0xc0] ss:$8 sps:$4 sm:$0xff]   ;;  %v2313_v53 = vld [vmem:[#allocation8 + $0xd4] ss:$8 sps:$4 sm:$0xff]   ;;  %v2311_v54 = vld [vmem:[#allocation8 + $0xd0] ss:$8 sps:$4 sm:$0xff]  }
  0x6c   :  { %2156 = vmatpush3.bf16.msra.mxu0 %v2244_v10  ;;  %v1892_v55 = vld [vmem:[%s2865_s5] ss:$0 sm:$0xff]  ;;  %v2314_v1 = vld [vmem:[#allocation8 + $0xe0] ss:$8 sps:$4 sm:$0xff]   ;;  %v2319_v2 = vld [vmem:[#allocation8 + $0xf4] ss:$8 sps:$4 sm:$0xff]  }
  0x6d   :  { %2157 = vmatprep.subr.bf16.mxu0 %v2653_v0  ;;  %322 = vmatpush1.bf16.msra.mxu1 %v2262_v17  ;;  %v2316_v63 = vld [vmem:[#allocation8 + $0xe4] ss:$8 sps:$4 sm:$0xff]   ;;  %v2317_v3 = vld [vmem:[#allocation8 + $0xf0] ss:$8 sps:$4 sm:$0xff]   ;;  %v2320_v4 = vld [vmem:[#allocation8 + $0x100] ss:$8 sps:$4 sm:$0xff]  }
  0x6e   :  { %323 = vmatprep.subr.bf16.mxu1 %v2263_v18  ;;  %v2322_v5 = vld [vmem:[#allocation8 + $0x104] ss:$8 sps:$4 sm:$0xff]   ;;  %v2325_v6 = vld [vmem:[#allocation8 + $0x114] ss:$8 sps:$4 sm:$0xff]   ;;  %v2323_v7 = vld [vmem:[#allocation8 + $0x110] ss:$8 sps:$4 sm:$0xff]  }
  0x6f   :  { %v2328_v8 = vld [vmem:[#allocation8 + $0x124] ss:$8 sps:$4 sm:$0xff]   ;;  %v2326_v9 = vld [vmem:[#allocation8 + $0x120] ss:$8 sps:$4 sm:$0xff]   ;;  %v2331_v10 = vld [vmem:[#allocation8 + $0x134] ss:$8 sps:$4 sm:$0xff]  }
  0x70   :  { %2158 = vmatpush3.bf16.msra.mxu0 %v2245_v12  ;;  %v2329_v11 = vld [vmem:[#allocation8 + $0x130] ss:$8 sps:$4 sm:$0xff]   ;;  %v2334_v12 = vld [vmem:[#allocation8 + $0x144] ss:$8 sps:$4 sm:$0xff]   ;;  %v2332_v13 = vld [vmem:[#allocation8 + $0x140] ss:$8 sps:$4 sm:$0xff]  }
  0x71   :  { %2159 = vmatprep.subr.bf16.mxu0 %v2653_v0  ;;  %324 = vmatpush1.bf16.msra.mxu1 %v2265_v20  ;;  %v2337_v14 = vld [vmem:[#allocation8 + $0x154] ss:$8 sps:$4 sm:$0xff]   ;;  %v2335_v15 = vld [vmem:[#allocation8 + $0x150] ss:$8 sps:$4 sm:$0xff]   ;;  %v2338_v17 = vld [vmem:[#allocation8 + $0x160] ss:$8 sps:$4 sm:$0xff]  }
  0x72   :  { %325 = vmatprep.subr.bf16.mxu1 %v2266_v21  ;;  %v2343_v18 = vld [vmem:[#allocation8 + $0x174] ss:$8 sps:$4 sm:$0xff]   ;;  %v2346_v20 = vld [vmem:[#allocation8 + $0x184] ss:$8 sps:$4 sm:$0xff]   ;;  %v2344_v21 = vld [vmem:[#allocation8 + $0x180] ss:$8 sps:$4 sm:$0xff]  }
  0x73   :  { %v2355_v26 = vld [vmem:[#allocation8 + $0x1b4] ss:$8 sps:$4 sm:$0xff]  }
  0x74   :  { %2160 = vmatpush3.bf16.msra.mxu0 %v2246_v16  ;;  %v2340_v16 = vld [vmem:[#allocation8 + $0x164] ss:$8 sps:$4 sm:$0xff]  }
  0x75   :  { %2161 = vmatprep.subr.bf16.mxu0 %v2653_v0  ;;  %326 = vmatpush1.bf16.msra.mxu1 %v2268_v23  ;;  %v2347_v23 = vld [vmem:[#allocation8 + $0x190] ss:$8 sps:$4 sm:$0xff]  }
  0x76   :  { %327 = vmatprep.subr.bf16.mxu1 %v2269_v24  ;;  %v2352_v24 = vld [vmem:[#allocation8 + $0x1a4] ss:$8 sps:$4 sm:$0xff]  }
  0x78   :  { %2162 = vmatpush3.bf16.msra.mxu0 %v2247_v19  ;;  %v2341_v19 = vld [vmem:[#allocation8 + $0x170] ss:$8 sps:$4 sm:$0xff]  }
  0x79   :  { %328 = vmatpush1.bf16.msra.mxu1 %v2271_v25  ;;  %562 = vmatprep.subr.bf16.mxu0 %v2274_v28  ;;  %v2350_v25 = vld [vmem:[#allocation8 + $0x1a0] ss:$8 sps:$4 sm:$0xff]   ;;  %v2358_v28 = vld [vmem:[#allocation8 + $0x1c4] ss:$8 sps:$4 sm:$0xff]  }
  0x7a   :  { %812 = vmatprep.subr.bf16.mxu1 %v2322_v5  ;;  %v2389_v5 = vld [vmem:[#allocation8 + $0x270] ss:$8 sps:$4 sm:$0xff]  }
  0x7b   :  { %2164 = vmatmul.mubr.bf16.vlgmr.msra.gmra.mrb[0].mxu0 %v91_v22  ;;  %v2349_v22 = vld [vmem:[#allocation8 + $0x194] ss:$8 sps:$4 sm:$0xff]  }
  0x7c   :  { %563 = vmatpush1.bf16.msra.mxu0 %v2272_v27  ;;  %v2353_v27 = vld [vmem:[#allocation8 + $0x1b0] ss:$8 sps:$4 sm:$0xff]  }
  0x7d   :  { %564 = vmatprep.subr.bf16.mxu0 %v2277_v29  ;;  %v2356_v29 = vld [vmem:[#allocation8 + $0x1c0] ss:$8 sps:$4 sm:$0xff]  }
  0x80   :  { %565 = vmatpush1.bf16.msra.mxu0 %v2275_v30  ;;  %v2361_v30 = vld [vmem:[#allocation8 + $0x1d4] ss:$8 sps:$4 sm:$0xff]  }
  0x81   :  { %566 = vmatprep.subr.bf16.mxu0 %v2280_v31  ;;  %v2359_v31 = vld [vmem:[#allocation8 + $0x1d0] ss:$8 sps:$4 sm:$0xff]  }
  0x84   :  { %567 = vmatpush1.bf16.msra.mxu0 %v2278_v32  ;;  %v223_v32 = vlaneseq }
  0x85   :  { %568 = vmatprep.subr.bf16.mxu0 %v2283_v33 }
  0x86   :  { %v224_v33 = vshrl.u32 %v223_v32, 7  ;;  %v2410_v32 = vld [vmem:[#allocation8 + $0x2e0] ss:$8 sps:$4 sm:$0xff]  }
  0x88   :  { %569 = vmatpush1.bf16.msra.mxu0 %v2281_v34  ;;  %v2777_v34 = vsub.s32 0, %v224_v33 }
  0x89   :  { %570 = vmatprep.subr.bf16.mxu0 %v2286_v35  ;;  %v221_v35 = vld [vmem:[%s2865_s5 + $0x1] sm:$0x3] }
  0x8c   :  { %571 = vmatpush1.bf16.msra.mxu0 %v2284_v36  ;;  %v2782_v36 = vsub.s32 1, %v224_v33  ;;  %v2415_v33 = vld [vmem:[#allocation8 + $0x2f4] ss:$8 sps:$4 sm:$0xff]  }
  0x8d   :  { %572 = vmatprep.subr.bf16.mxu0 %v2289_v37  ;;  %v226_v37 = vrot.slane %v221_v35, %v2777_v34 }
  0x90   :  { %573 = vmatpush1.bf16.msra.mxu0 %v2287_v38  ;;  %v230_v38 = vrot.slane %v221_v35, %v2782_v36  ;;  %v2413_v35 = vld [vmem:[#allocation8 + $0x2f0] ss:$8 sps:$4 sm:$0xff]  }
  0x91   :  { %574 = vmatprep.subr.bf16.mxu0 %v2292_v39 }
  0x94   :  { %575 = vmatpush1.bf16.msra.mxu0 %v2290_v40 }
  0x95   :  { %576 = vmatprep.subr.bf16.mxu0 %v2295_v41 }
  0x98   :  { %577 = vmatpush1.bf16.msra.mxu0 %v2293_v42 }
  0x99   :  { %578 = vmatprep.subr.bf16.mxu0 %v2298_v43 }
  0x9c   :  { %579 = vmatpush1.bf16.msra.mxu0 %v2296_v44 }
  0x9d   :  { %580 = vmatprep.subr.bf16.mxu0 %v2301_v45 }
  0xa0   :  { %581 = vmatpush1.bf16.msra.mxu0 %v2299_v46 }
  0xa1   :  { %582 = vmatprep.subr.bf16.mxu0 %v2304_v47 }
  0xa4   :  { %583 = vmatpush1.bf16.msra.mxu0 %v2302_v48 }
  0xa5   :  { %584 = vmatprep.subr.bf16.mxu0 %v2307_v49  ;;  %v2364_v49 = vld [vmem:[#allocation8 + $0x1e4] ss:$8 sps:$4 sm:$0xff]  }
  0xa8   :  { %585 = vmatpush1.bf16.msra.mxu0 %v2305_v50  ;;  %v2362_v50 = vld [vmem:[#allocation8 + $0x1e0] ss:$8 sps:$4 sm:$0xff]  }
  0xa9   :  { %586 = vmatprep.subr.bf16.mxu0 %v2310_v51  ;;  %v2367_v51 = vld [vmem:[#allocation8 + $0x1f4] ss:$8 sps:$4 sm:$0xff]  }
  0xac   :  { %587 = vmatpush1.bf16.msra.mxu0 %v2308_v52  ;;  %v2365_v52 = vld [vmem:[#allocation8 + $0x1f0] ss:$8 sps:$4 sm:$0xff]  }
  0xad   :  { %588 = vmatprep.subr.bf16.mxu0 %v2313_v53  ;;  %v2368_v53 = vld [vmem:[#allocation8 + $0x200] ss:$8 sps:$4 sm:$0xff]  }
  0xb0   :  { %589 = vmatpush1.bf16.msra.mxu0 %v2311_v54  ;;  %v2370_v54 = vld [vmem:[#allocation8 + $0x204] ss:$8 sps:$4 sm:$0xff]  }
  0xb1   :  { %590 = vmatprep.subr.bf16.mxu0 %v2316_v63  ;;  %v2385_v63 = vld [vmem:[#allocation8 + $0x254] ss:$8 sps:$4 sm:$0xff]  }
  0xb4   :  { %591 = vmatpush1.bf16.msra.mxu0 %v2314_v1  ;;  %v2383_v1 = vld [vmem:[#allocation8 + $0x250] ss:$8 sps:$4 sm:$0xff]  }
  0xb5   :  { %592 = vmatprep.subr.bf16.mxu0 %v2319_v2  ;;  %v2388_v2 = vld [vmem:[#allocation8 + $0x264] ss:$8 sps:$4 sm:$0xff]  }
  0xb8   :  { %593 = vmatpush1.bf16.msra.mxu0 %v2317_v3  ;;  %v2386_v3 = vld [vmem:[#allocation8 + $0x260] ss:$8 sps:$4 sm:$0xff]  }
  0xb9   :  { %1062 = vmatprep.subr.bf16.mxu0 %v2370_v54  ;;  %v2440_v54 = vld [vmem:[#allocation8 + $0x380] ss:$8 sps:$4 sm:$0xff]  }
 0x14e   :  { %v197_v56 = vpop.f32.mrb[0].mxu0 }
 0x14f   :  { %v198_v57 = vadd.f32 %v1892_v55, %v197_v56  ;;  %v2165_v58 = vpop.f32.mrb[1].mxu0  ;;  %v2373_v55 = vld [vmem:[#allocation8 + $0x214] ss:$8 sps:$4 sm:$0xff]   ;;  %v2371_v56 = vld [vmem:[#allocation8 + $0x210] ss:$8 sps:$4 sm:$0xff]  }
 0x150   :  { %v200_v59 = vpop.f32.mrb[2].mxu0  ;;  %v2374_v58 = vld [vmem:[#allocation8 + $0x220] ss:$8 sps:$4 sm:$0xff]  }
 0x151   :  { %v203_v60 = vmax.f32 %v198_v57, 0.0  ;;  %v2166_v61 = vpop.f32.mrb[3].mxu0  ;;  %v2376_v57 = vld [vmem:[#allocation8 + $0x224] ss:$8 sps:$4 sm:$0xff]   ;;  %v2379_v59 = vld [vmem:[#allocation8 + $0x234] ss:$8 sps:$4 sm:$0xff]  }
 0x152   :  { %v2382_v61 = vld [vmem:[#allocation8 + $0x244] ss:$8 sps:$4 sm:$0xff]  }
 0x153   :  { %v204_v62 = vpack.c.bf16 %v203_v60, %v203_v60  ;;  %v2377_v60 = vld [vmem:[#allocation8 + $0x230] ss:$8 sps:$4 sm:$0xff]  }
 0x155   :  { %346 = vmatmul.mubr.bf16.vlgmr.msra.gmra.mrb[0].mxu1 %v204_v62  ;;  %v2380_v62 = vld [vmem:[#allocation8 + $0x240] ss:$8 sps:$4 sm:$0xff]  }
 0x156   :  { %813 = vmatpush1.bf16.msra.mxu1 %v2320_v4  ;;  %v2391_v4 = vld [vmem:[#allocation8 + $0x274] ss:$8 sps:$4 sm:$0xff]  }
 0x157   :  { %814 = vmatprep.subr.bf16.mxu1 %v2325_v6  ;;  %v2394_v6 = vld [vmem:[#allocation8 + $0x284] ss:$8 sps:$4 sm:$0xff]  }
 0x15a   :  { %815 = vmatpush1.bf16.msra.mxu1 %v2323_v7  ;;  %v2392_v7 = vld [vmem:[#allocation8 + $0x280] ss:$8 sps:$4 sm:$0xff]  }
 0x15b   :  { %816 = vmatprep.subr.bf16.mxu1 %v2328_v8  ;;  %v2397_v8 = vld [vmem:[#allocation8 + $0x294] ss:$8 sps:$4 sm:$0xff]  }
 0x15e   :  { %817 = vmatpush1.bf16.msra.mxu1 %v2326_v9  ;;  %v2395_v9 = vld [vmem:[#allocation8 + $0x290] ss:$8 sps:$4 sm:$0xff]  }
 0x15f   :  { %818 = vmatprep.subr.bf16.mxu1 %v2331_v10  ;;  %v2400_v10 = vld [vmem:[#allocation8 + $0x2a4] ss:$8 sps:$4 sm:$0xff]  }
 0x162   :  { %819 = vmatpush1.bf16.msra.mxu1 %v2329_v11  ;;  %v2398_v11 = vld [vmem:[#allocation8 + $0x2a0] ss:$8 sps:$4 sm:$0xff]  }
 0x163   :  { %820 = vmatprep.subr.bf16.mxu1 %v2334_v12  ;;  %v2403_v12 = vld [vmem:[#allocation8 + $0x2b4] ss:$8 sps:$4 sm:$0xff]  }
 0x166   :  { %821 = vmatpush1.bf16.msra.mxu1 %v2332_v13  ;;  %v2401_v13 = vld [vmem:[#allocation8 + $0x2b0] ss:$8 sps:$4 sm:$0xff]  }
 0x167   :  { %822 = vmatprep.subr.bf16.mxu1 %v2337_v14  ;;  %v2406_v14 = vld [vmem:[#allocation8 + $0x2c4] ss:$8 sps:$4 sm:$0xff]  }
 0x16a   :  { %823 = vmatpush1.bf16.msra.mxu1 %v2335_v15  ;;  %v2404_v15 = vld [vmem:[#allocation8 + $0x2c0] ss:$8 sps:$4 sm:$0xff]  }
 0x16b   :  { %824 = vmatprep.subr.bf16.mxu1 %v2340_v16  ;;  %v2409_v16 = vld [vmem:[#allocation8 + $0x2d4] ss:$8 sps:$4 sm:$0xff]  }
 0x16e   :  { %825 = vmatpush1.bf16.msra.mxu1 %v2338_v17  ;;  %v2407_v17 = vld [vmem:[#allocation8 + $0x2d0] ss:$8 sps:$4 sm:$0xff]  }
 0x16f   :  { %826 = vmatprep.subr.bf16.mxu1 %v2343_v18  ;;  %v390_v18 = vld [vmem:[%s2865_s5 + $0x3] sm:$0x3] }
 0x172   :  { %827 = vmatpush1.bf16.msra.mxu1 %v2341_v19  ;;  %v395_v19 = vrot.slane %v390_v18, %v2777_v34 }
 0x173   :  { %828 = vmatprep.subr.bf16.mxu1 %v2346_v20  ;;  %v399_v20 = vrot.slane %v390_v18, %v2782_v36  ;;  %v2461_v18 = vld [vmem:[#allocation8 + $0x3f0] ss:$8 sps:$4 sm:$0xff]  }
 0x176   :  { %829 = vmatpush1.bf16.msra.mxu1 %v2344_v21 }
 0x177   :  { %830 = vmatprep.subr.bf16.mxu1 %v2349_v22 }
 0x17a   :  { %831 = vmatpush1.bf16.msra.mxu1 %v2347_v23 }
 0x17b   :  { %832 = vmatprep.subr.bf16.mxu1 %v2352_v24 }
 0x17e   :  { %833 = vmatpush1.bf16.msra.mxu1 %v2350_v25 }
 0x17f   :  { %834 = vmatprep.subr.bf16.mxu1 %v2355_v26 }
 0x182   :  { %835 = vmatpush1.bf16.msra.mxu1 %v2353_v27 }
 0x183   :  { %836 = vmatprep.subr.bf16.mxu1 %v2358_v28 }
 0x186   :  { %837 = vmatpush1.bf16.msra.mxu1 %v2356_v29 }
 0x187   :  { %838 = vmatprep.subr.bf16.mxu1 %v2361_v30 }
 0x18a   :  { %839 = vmatpush1.bf16.msra.mxu1 %v2359_v31  ;;  %v2412_v31 = vld [vmem:[#allocation8 + $0x2e4] ss:$8 sps:$4 sm:$0xff]  }
 0x18b   :  { %840 = vmatprep.subr.bf16.mxu1 %v2364_v49  ;;  %v2436_v49 = vld [vmem:[#allocation8 + $0x364] ss:$8 sps:$4 sm:$0xff]  }
 0x18e   :  { %841 = vmatpush1.bf16.msra.mxu1 %v2362_v50  ;;  %v2434_v50 = vld [vmem:[#allocation8 + $0x360] ss:$8 sps:$4 sm:$0xff]  }
 0x18f   :  { %842 = vmatprep.subr.bf16.mxu1 %v2367_v51  ;;  %v2439_v51 = vld [vmem:[#allocation8 + $0x374] ss:$8 sps:$4 sm:$0xff]  }
 0x192   :  { %843 = vmatpush1.bf16.msra.mxu1 %v2365_v52  ;;  %v2437_v52 = vld [vmem:[#allocation8 + $0x370] ss:$8 sps:$4 sm:$0xff]  }
 0x228   :  { %v347_v39 = vpop.f32.mrb[0].mxu1 }
 0x229   :  { %v348_v40 = vadd.f32 %v347_v39, %v226_v37  ;;  %v349_v41 = vpop.f32.mrb[1].mxu1  ;;  %v2416_v37 = vld [vmem:[#allocation8 + $0x300] ss:$8 sps:$4 sm:$0xff]   ;;  %v2421_v39 = vld [vmem:[#allocation8 + $0x314] ss:$8 sps:$4 sm:$0xff]  }
 0x22a   :  { %v350_v42 = vadd.f32 %v349_v41, %v230_v38  ;;  %v351_v43 = vpop.f32.mrb[2].mxu1  ;;  %v2418_v38 = vld [vmem:[#allocation8 + $0x304] ss:$8 sps:$4 sm:$0xff]  }
 0x22b   :  { %v354_v44 = vmax.f32 %v348_v40, 0.0  ;;  %v352_v45 = vpop.f32.mrb[3].mxu1  ;;  %1312 = vmatprep.subr.bf16.mxu1 %v2418_v38  ;;  %v2419_v40 = vld [vmem:[#allocation8 + $0x310] ss:$8 sps:$4 sm:$0xff]   ;;  %v2424_v41 = vld [vmem:[#allocation8 + $0x324] ss:$8 sps:$4 sm:$0xff]  }
 0x22c   :  { %v355_v46 = vmax.f32 %v350_v42, 0.0  ;;  %v2422_v42 = vld [vmem:[#allocation8 + $0x320] ss:$8 sps:$4 sm:$0xff]   ;;  %v2427_v43 = vld [vmem:[#allocation8 + $0x334] ss:$8 sps:$4 sm:$0xff]  }
 0x22d   :  { %v356_v48 = vpack.c.bf16 %v354_v44, %v354_v44  ;;  %v2425_v44 = vld [vmem:[#allocation8 + $0x330] ss:$8 sps:$4 sm:$0xff]   ;;  %v2430_v45 = vld [vmem:[#allocation8 + $0x344] ss:$8 sps:$4 sm:$0xff]  }
 0x22e   :  { %v357_v47 = vpack.c.bf16 %v355_v46, %v355_v46  ;;  %v2428_v46 = vld [vmem:[#allocation8 + $0x340] ss:$8 sps:$4 sm:$0xff]  }
 0x230   :  { %594 = vmatprep.mubr.bf16.mxu0 %v357_v47  ;;  %v2433_v47 = vld [vmem:[#allocation8 + $0x354] ss:$8 sps:$4 sm:$0xff]  }
 0x231   :  { %595 = vmatmul.mubr.bf16.vlgmr.msra.gmra.mrb[4].mxu0 %v356_v48  ;;  %v2431_v48 = vld [vmem:[#allocation8 + $0x350] ss:$8 sps:$4 sm:$0xff]  }
 0x232   :  { %1063 = vmatpush1.bf16.msra.mxu0 %v2368_v53  ;;  %v2442_v53 = vld [vmem:[#allocation8 + $0x384] ss:$8 sps:$4 sm:$0xff]  }
 0x233   :  { %1064 = vmatprep.subr.bf16.mxu0 %v2373_v55  ;;  %v2445_v55 = vld [vmem:[#allocation8 + $0x394] ss:$8 sps:$4 sm:$0xff]  }
 0x236   :  { %1065 = vmatpush1.bf16.msra.mxu0 %v2371_v56  ;;  %v2443_v56 = vld [vmem:[#allocation8 + $0x390] ss:$8 sps:$4 sm:$0xff]  }
 0x237   :  { %1066 = vmatprep.subr.bf16.mxu0 %v2376_v57  ;;  %v2448_v57 = vld [vmem:[#allocation8 + $0x3a4] ss:$8 sps:$4 sm:$0xff]  }
 0x23a   :  { %1067 = vmatpush1.bf16.msra.mxu0 %v2374_v58  ;;  %v2446_v58 = vld [vmem:[#allocation8 + $0x3a0] ss:$8 sps:$4 sm:$0xff]  }
 0x23b   :  { %1068 = vmatprep.subr.bf16.mxu0 %v2379_v59  ;;  %v2451_v59 = vld [vmem:[#allocation8 + $0x3b4] ss:$8 sps:$4 sm:$0xff]  }
 0x23e   :  { %1069 = vmatpush1.bf16.msra.mxu0 %v2377_v60  ;;  %v2449_v60 = vld [vmem:[#allocation8 + $0x3b0] ss:$8 sps:$4 sm:$0xff]  }
 0x23f   :  { %1070 = vmatprep.subr.bf16.mxu0 %v2382_v61  ;;  %v2454_v61 = vld [vmem:[#allocation8 + $0x3c4] ss:$8 sps:$4 sm:$0xff]  }
 0x242   :  { %1071 = vmatpush1.bf16.msra.mxu0 %v2380_v62  ;;  %v2452_v62 = vld [vmem:[#allocation8 + $0x3c0] ss:$8 sps:$4 sm:$0xff]  }
 0x243   :  { %1072 = vmatprep.subr.bf16.mxu0 %v2385_v63  ;;  %v2457_v63 = vld [vmem:[#allocation8 + $0x3d4] ss:$8 sps:$4 sm:$0xff]  }
 0x246   :  { %1073 = vmatpush1.bf16.msra.mxu0 %v2383_v1  ;;  %v2455_v1 = vld [vmem:[#allocation8 + $0x3d0] ss:$8 sps:$4 sm:$0xff]  }
 0x247   :  { %1074 = vmatprep.subr.bf16.mxu0 %v2388_v2  ;;  %v640_v2 = vld [vmem:[%s2865_s5 + $0x5] sm:$0x3] }
 0x24a   :  { %1075 = vmatpush1.bf16.msra.mxu0 %v2386_v3  ;;  %v645_v3 = vrot.slane %v640_v2, %v2777_v34 }
 0x24b   :  { %1076 = vmatprep.subr.bf16.mxu0 %v2391_v4  ;;  %v649_v4 = vrot.slane %v640_v2, %v2782_v36 }
 0x24e   :  { %1077 = vmatpush1.bf16.msra.mxu0 %v2389_v5 }
 0x24f   :  { %1078 = vmatprep.subr.bf16.mxu0 %v2394_v6 }
 0x252   :  { %1079 = vmatpush1.bf16.msra.mxu0 %v2392_v7 }
 0x253   :  { %1080 = vmatprep.subr.bf16.mxu0 %v2397_v8 }
 0x256   :  { %1081 = vmatpush1.bf16.msra.mxu0 %v2395_v9 }
 0x257   :  { %1082 = vmatprep.subr.bf16.mxu0 %v2400_v10 }
 0x25a   :  { %1083 = vmatpush1.bf16.msra.mxu0 %v2398_v11 }
 0x25b   :  { %1084 = vmatprep.subr.bf16.mxu0 %v2403_v12 }
 0x25e   :  { %1085 = vmatpush1.bf16.msra.mxu0 %v2401_v13 }
 0x25f   :  { %1086 = vmatprep.subr.bf16.mxu0 %v2406_v14 }
 0x262   :  { %1087 = vmatpush1.bf16.msra.mxu0 %v2404_v15  ;;  %v2460_v15 = vld [vmem:[#allocation8 + $0x3e4] ss:$8 sps:$4 sm:$0xff]  }
 0x263   :  { %1088 = vmatprep.subr.bf16.mxu0 %v2409_v16  ;;  %v2458_v16 = vld [vmem:[#allocation8 + $0x3e0] ss:$8 sps:$4 sm:$0xff]  }
 0x266   :  { %1089 = vmatpush1.bf16.msra.mxu0 %v2407_v17  ;;  %v2463_v17 = vld [vmem:[#allocation8 + $0x3f4] ss:$8 sps:$4 sm:$0xff]  }
 0x267   :  { %1090 = vmatprep.subr.bf16.mxu0 %v2412_v31  ;;  %v890_v31 = vld [vmem:[%s2865_s5 + $0x7] sm:$0x3] }
 0x26a   :  { %1091 = vmatpush1.bf16.msra.mxu0 %v2410_v32  ;;  %v895_v32 = vrot.slane %v890_v31, %v2777_v34 }
 0x26b   :  { %1092 = vmatprep.subr.bf16.mxu0 %v2415_v33  ;;  %v899_v33 = vrot.slane %v890_v31, %v2782_v36 }
 0x26e   :  { %1093 = vmatpush1.bf16.msra.mxu0 %v2413_v35 }
 0x304   :  { %v596_v21 = vpop.f32.mrb[4].mxu0 }
 0x305   :  { %v597_v22 = vadd.f32 %v596_v21, %v395_v19  ;;  %v598_v23 = vpop.f32.mrb[5].mxu0  ;;  %v2464_v19 = vld [vmem:[#allocation10 + $0x40] sm:$0xff]   ;;  %v2466_v21 = vld [vmem:[#allocation10 + $0x48] sm:$0xff]  }
 0x306   :  { %v599_v24 = vadd.f32 %v598_v23, %v399_v20  ;;  %v600_v25 = vpop.f32.mrb[6].mxu0  ;;  %v2465_v20 = vld [vmem:[#allocation10] sm:$0xff]   ;;  %2098 = vmatprep.subr.bf16.mxu0 %v2464_v19  ;;  %v2468_v23 = vld [vmem:[#allocation10 + $0x50] sm:$0xff]  }
 0x307   :  { %v603_v26 = vmax.f32 %v597_v22, 0.0  ;;  %v601_v27 = vpop.f32.mrb[7].mxu0  ;;  %v2467_v22 = vld [vmem:[#allocation10 + $0x8] sm:$0xff]   ;;  %v2470_v25 = vld [vmem:[#allocation10 + $0x58] sm:$0xff]  }
 0x308   :  { %v604_v28 = vmax.f32 %v599_v24, 0.0  ;;  %v2469_v24 = vld [vmem:[#allocation10 + $0x10] sm:$0xff]   ;;  %v2472_v27 = vld [vmem:[#allocation10 + $0x60] sm:$0xff]  }
 0x309   :  { %v605_v30 = vpack.c.bf16 %v603_v26, %v603_v26  ;;  %v2471_v26 = vld [vmem:[#allocation10 + $0x18] sm:$0xff]  }
 0x30a   :  { %v606_v29 = vpack.c.bf16 %v604_v28, %v604_v28  ;;  %v2473_v28 = vld [vmem:[#allocation10 + $0x20] sm:$0xff]  }
 0x30c   :  { %844 = vmatprep.mubr.bf16.mxu1 %v606_v29  ;;  %v2474_v29 = vld [vmem:[#allocation10 + $0x68] sm:$0xff]  }
 0x30d   :  { %845 = vmatmul.mubr.bf16.vlgmr.msra.gmra.mrb[4].mxu1 %v605_v30  ;;  %v2475_v30 = vld [vmem:[#allocation10 + $0x28] sm:$0xff]  }
 0x30e   :  { %1313 = vmatpush1.bf16.msra.mxu1 %v2416_v37 }
 0x30f   :  { %1314 = vmatprep.subr.bf16.mxu1 %v2421_v39 }
 0x312   :  { %1315 = vmatpush1.bf16.msra.mxu1 %v2419_v40 }
 0x313   :  { %1316 = vmatprep.subr.bf16.mxu1 %v2424_v41 }
 0x316   :  { %1317 = vmatpush1.bf16.msra.mxu1 %v2422_v42 }
 0x317   :  { %1318 = vmatprep.subr.bf16.mxu1 %v2427_v43 }
 0x31a   :  { %1319 = vmatpush1.bf16.msra.mxu1 %v2425_v44 }
 0x31b   :  { %1320 = vmatprep.subr.bf16.mxu1 %v2430_v45 }
 0x31e   :  { %1321 = vmatpush1.bf16.msra.mxu1 %v2428_v46  ;;  %v2476_v46 = vld [vmem:[#allocation10 + $0x70] sm:$0xff]  }
 0x31f   :  { %1322 = vmatprep.subr.bf16.mxu1 %v2433_v47  ;;  %v2477_v47 = vld [vmem:[#allocation10 + $0x30] sm:$0xff]  }
 0x322   :  { %1323 = vmatpush1.bf16.msra.mxu1 %v2431_v48  ;;  %v2478_v48 = vld [vmem:[#allocation10 + $0x78] sm:$0xff]  }
 0x323   :  { %1324 = vmatprep.subr.bf16.mxu1 %v2436_v49  ;;  %v2479_v49 = vld [vmem:[#allocation10 + $0x38] sm:$0xff]  }
 0x326   :  { %1325 = vmatpush1.bf16.msra.mxu1 %v2434_v50  ;;  %v2480_v50 = vld [vmem:[#allocation5 + $0x40] sm:$0xff]  }
 0x327   :  { %1326 = vmatprep.subr.bf16.mxu1 %v2439_v51  ;;  %v2481_v51 = vld [vmem:[#allocation5 + $0x48] sm:$0xff]  }
 0x32a   :  { %1327 = vmatpush1.bf16.msra.mxu1 %v2437_v52  ;;  %v2482_v52 = vld [vmem:[#allocation5 + $0x50] sm:$0xff]  }
 0x32b   :  { %1328 = vmatprep.subr.bf16.mxu1 %v2442_v53  ;;  %v2483_v53 = vld [vmem:[#allocation5 + $0x58] sm:$0xff]  }
 0x32e   :  { %1329 = vmatpush1.bf16.msra.mxu1 %v2440_v54  ;;  %v2484_v54 = vld [vmem:[#allocation5 + $0x60] sm:$0xff]  }
 0x32f   :  { %1330 = vmatprep.subr.bf16.mxu1 %v2445_v55  ;;  %v2485_v55 = vld [vmem:[#allocation5 + $0x68] sm:$0xff]  }
 0x332   :  { %1331 = vmatpush1.bf16.msra.mxu1 %v2443_v56  ;;  %v1140_v56 = vld [vmem:[%s2865_s5 + $0x9] sm:$0x3] }
 0x333   :  { %1332 = vmatprep.subr.bf16.mxu1 %v2448_v57  ;;  %v1145_v57 = vrot.slane %v1140_v56, %v2777_v34  ;;  %v2487_v34 = vld [vmem:[#allocation5 + $0x78] sm:$0xff]  }
 0x336   :  { %1333 = vmatpush1.bf16.msra.mxu1 %v2446_v58  ;;  %v1149_v58 = vrot.slane %v1140_v56, %v2782_v36  ;;  %v2488_v36 = vld [vmem:[#allocation5 + $0x80] sm:$0xff]  }
 0x337   :  { %1334 = vmatprep.subr.bf16.mxu1 %v2451_v59 }
 0x33a   :  { %1335 = vmatpush1.bf16.msra.mxu1 %v2449_v60 }
 0x33b   :  { %1336 = vmatprep.subr.bf16.mxu1 %v2454_v61 }
 0x33e   :  { %1337 = vmatpush1.bf16.msra.mxu1 %v2452_v62 }
 0x33f   :  { %1338 = vmatprep.subr.bf16.mxu1 %v2457_v63 }
 0x342   :  { %1339 = vmatpush1.bf16.msra.mxu1 %v2455_v1 }
 0x343   :  { %1340 = vmatprep.subr.bf16.mxu1 %v2460_v15 }
 0x346   :  { %1341 = vmatpush1.bf16.msra.mxu1 %v2458_v16 }
 0x347   :  { %1342 = vmatprep.subr.bf16.mxu1 %v2463_v17 }
 0x34a   :  { %1343 = vmatpush1.bf16.msra.mxu1 %v2461_v18 }
 0x34b   :  { %2167 = vmatprep.subr.bf16.mxu1 %v2653_v0 }
 0x3e0   :  { %v846_v5 = vpop.f32.mrb[4].mxu1 }
 0x3e1   :  { %v847_v6 = vadd.f32 %v846_v5, %v645_v3  ;;  %v848_v7 = vpop.f32.mrb[5].mxu1 }
 0x3e2   :  { %v849_v8 = vadd.f32 %v848_v7, %v649_v4  ;;  %v850_v9 = vpop.f32.mrb[6].mxu1  ;;  %v2489_v7 = vld [vmem:[#allocation5 + $0x88] sm:$0xff]  }
 0x3e3   :  { %v853_v10 = vmax.f32 %v847_v6, 0.0  ;;  %v851_v11 = vpop.f32.mrb[7].mxu1  ;;  %v2486_v6 = vld [vmem:[#allocation5 + $0x70] sm:$0xff]   ;;  %v2491_v9 = vld [vmem:[#allocation5 + $0x98] sm:$0xff]  }
 0x3e4   :  { %v854_v12 = vmax.f32 %v849_v8, 0.0  ;;  %v2490_v8 = vld [vmem:[#allocation5 + $0x90] sm:$0xff]   ;;  %v2493_v11 = vld [vmem:[#allocation5 + $0xa8] sm:$0xff]  }
 0x3e5   :  { %v855_v14 = vpack.c.bf16 %v853_v10, %v853_v10  ;;  %v2492_v10 = vld [vmem:[#allocation5 + $0xa0] sm:$0xff]  }
 0x3e6   :  { %v856_v13 = vpack.c.bf16 %v854_v12, %v854_v12 }
 0x3e8   :  { %1094 = vmatprep.mubr.bf16.mxu0 %v856_v13  ;;  %v2045_v13 = vld [vmem:[%s2865_s5 + $0xb] ss:$0 sm:$0xff] }
 0x3e9   :  { %1095 = vmatmul.mubr.bf16.vlgmr.msra.gmra.mrb[8].mxu0 %v855_v14 }
 0x3ea   :  { %2099 = vmatpush3.bf16.msra.mxu0 %v2465_v20 }
 0x3eb   :  { %2100 = vmatprep.subr.bf16.mxu0 %v2466_v21  ;;  %v2494_v21 = vld [vmem:[#allocation5 + $0xb0] sm:$0xff]  }
 0x3ee   :  { %2101 = vmatpush3.bf16.msra.mxu0 %v2467_v22  ;;  %v2495_v22 = vld [vmem:[#allocation5 + $0xb8] sm:$0xff]  }
 0x3ef   :  { %2102 = vmatprep.subr.bf16.mxu0 %v2468_v23  ;;  %v2496_v23 = vld [vmem:[#allocation5 + $0xc0] sm:$0xff]  }
 0x3f2   :  { %2103 = vmatpush3.bf16.msra.mxu0 %v2469_v24  ;;  %v2497_v24 = vld [vmem:[#allocation5 + $0xc8] sm:$0xff]  }
 0x3f3   :  { %2104 = vmatprep.subr.bf16.mxu0 %v2470_v25  ;;  %v2498_v25 = vld [vmem:[#allocation5 + $0xd0] sm:$0xff]  }
 0x3f6   :  { %2105 = vmatpush3.bf16.msra.mxu0 %v2471_v26  ;;  %v2499_v26 = vld [vmem:[#allocation5 + $0xd8] sm:$0xff]  }
 0x3f7   :  { %2106 = vmatprep.subr.bf16.mxu0 %v2472_v27  ;;  %v2500_v27 = vld [vmem:[#allocation5 + $0xe0] sm:$0xff]  }
 0x3fa   :  { %2107 = vmatpush3.bf16.msra.mxu0 %v2473_v28  ;;  %v2501_v28 = vld [vmem:[#allocation5 + $0xe8] sm:$0xff]  }
 0x3fb   :  { %2108 = vmatprep.subr.bf16.mxu0 %v2474_v29  ;;  %v2062_v29 = vld [vmem:[%s2865_s5 + $0xc] ss:$0 sm:$0xff] }
 0x3fe   :  { %2109 = vmatpush3.bf16.msra.mxu0 %v2475_v30 }
 0x3ff   :  { %2110 = vmatprep.subr.bf16.mxu0 %v2476_v46 }
 0x402   :  { %2111 = vmatpush3.bf16.msra.mxu0 %v2477_v47 }
 0x403   :  { %2112 = vmatprep.subr.bf16.mxu0 %v2478_v48 }
 0x406   :  { %2113 = vmatpush3.bf16.msra.mxu0 %v2479_v49  ;;  %v2080_v49 = vld [vmem:[%s2865_s5 + $0xe] ss:$0 sm:$0xff] }
 0x407   :  { %2187 = vmatprep.subr.bf16.mxu0 %v2653_v0 }
 0x4bc   :  { %v1096_v35 = vpop.f32.mrb[8].mxu0 }
 0x4bd   :  { %v1097_v37 = vadd.f32 %v1096_v35, %v895_v32  ;;  %v1098_v38 = vpop.f32.mrb[9].mxu0 }
 0x4be   :  { %v1099_v39 = vadd.f32 %v1098_v38, %v899_v33  ;;  %v1100_v40 = vpop.f32.mrb[10].mxu0 }
 0x4bf   :  { %v1103_v41 = vmax.f32 %v1097_v37, 0.0  ;;  %v1101_v42 = vpop.f32.mrb[11].mxu0  ;;  %v2503_v40 = vld [vmem:[#allocation5 + $0xf8] sm:$0xff]  }
 0x4c0   :  { %v1104_v43 = vmax.f32 %v1099_v39, 0.0  ;;  %v2502_v39 = vld [vmem:[#allocation5 + $0xf0] sm:$0xff]  }
 0x4c1   :  { %v1105_v45 = vpack.c.bf16 %v1103_v41, %v1103_v41  ;;  %v2071_v41 = vld [vmem:[%s2865_s5 + $0xd] ss:$0 sm:$0xff] }
 0x4c2   :  { %v1106_v44 = vpack.c.bf16 %v1104_v43, %v1104_v43 }
 0x4c4   :  { %1344 = vmatprep.mubr.bf16.mxu1 %v1106_v44 }
 0x4c5   :  { %1345 = vmatmul.mubr.bf16.vlgmr.msra.gmra.mrb[8].mxu1 %v1105_v45 }
 0x4c6   :  { %2183 = vmatprep.mubr.msk.bf16.mxu1 %vm2654_vm0, %v2653_v0  ;;  %2168 = vmatpush3.bf16.msra.mxu1 %v2480_v50 }
 0x4c7   :  { %2169 = vmatprep.subr.bf16.mxu1 %v2653_v0 }
 0x4ca   :  { %2170 = vmatpush3.bf16.msra.mxu1 %v2481_v51 }
 0x4cb   :  { %2171 = vmatprep.subr.bf16.mxu1 %v2653_v0 }
 0x4ce   :  { %2172 = vmatpush3.bf16.msra.mxu1 %v2482_v52 }
 0x4cf   :  { %2173 = vmatprep.subr.bf16.mxu1 %v2653_v0 }
 0x4d2   :  { %2174 = vmatpush3.bf16.msra.mxu1 %v2483_v53 }
 0x4d3   :  { %2175 = vmatprep.subr.bf16.mxu1 %v2653_v0 }
 0x4d6   :  { %2176 = vmatpush3.bf16.msra.mxu1 %v2484_v54 }
 0x4d7   :  { %2177 = vmatprep.subr.bf16.mxu1 %v2653_v0 }
 0x4da   :  { %2178 = vmatpush3.bf16.msra.mxu1 %v2485_v55 }
 0x4db   :  { %2179 = vmatprep.subr.bf16.mxu1 %v2653_v0 }
 0x4de   :  { %2180 = vmatpush3.bf16.msra.mxu1 %v2486_v6 }
 0x4df   :  { %2181 = vmatprep.subr.bf16.mxu1 %v2653_v0 }
 0x4e2   :  { %2182 = vmatpush3.bf16.msra.mxu1 %v2487_v34 }
 0x4e3   :  { %2207 = vmatprep.subr.bf16.mxu1 %v2653_v0 }
 0x598   :  { %v1346_v59 = vpop.f32.mrb[8].mxu1 }
 0x599   :  { %v1347_v60 = vadd.f32 %v1346_v59, %v1145_v57  ;;  %v1348_v61 = vpop.f32.mrb[9].mxu1 }
 0x59a   :  { %v1349_v62 = vadd.f32 %v1348_v61, %v1149_v58  ;;  %v1350_v63 = vpop.f32.mrb[10].mxu1 }
 0x59b   :  { %v1353_v1 = vmax.f32 %v1347_v60, 0.0  ;;  %v1351_v2 = vpop.f32.mrb[11].mxu1 }
 0x59c   :  { %v1354_v3 = vmax.f32 %v1349_v62, 0.0 }
 0x59d   :  { %v1355_v5 = vpack.c.bf16 %v1353_v1, %v1353_v1 }
 0x59e   :  { %v1356_v4 = vpack.c.bf16 %v1354_v3, %v1354_v3 }
 0x5a0   :  { %1524 = vmatprep.mubr.bf16.mxu0 %v1356_v4 }
 0x5a1   :  { %1525 = vmatmul.mubr.bf16.vlgmr.msra.gmra.mrb[12].mxu0 %v1355_v5 }
 0x5a2   :  { %2203 = vmatprep.mubr.msk.bf16.mxu0 %vm2654_vm0, %v2653_v0  ;;  %2188 = vmatpush3.bf16.msra.mxu0 %v2488_v36 }
 0x5a3   :  { %2189 = vmatprep.subr.bf16.mxu0 %v2653_v0 }
 0x5a6   :  { %2190 = vmatpush3.bf16.msra.mxu0 %v2489_v7 }
 0x5a7   :  { %2191 = vmatprep.subr.bf16.mxu0 %v2653_v0 }
 0x5aa   :  { %2192 = vmatpush3.bf16.msra.mxu0 %v2490_v8 }
 0x5ab   :  { %2193 = vmatprep.subr.bf16.mxu0 %v2653_v0 }
 0x5ae   :  { %2194 = vmatpush3.bf16.msra.mxu0 %v2491_v9 }
 0x5af   :  { %2195 = vmatprep.subr.bf16.mxu0 %v2653_v0 }
 0x5b2   :  { %2196 = vmatpush3.bf16.msra.mxu0 %v2492_v10 }
 0x5b3   :  { %2197 = vmatprep.subr.bf16.mxu0 %v2653_v0 }
 0x5b6   :  { %2198 = vmatpush3.bf16.msra.mxu0 %v2493_v11 }
 0x5b7   :  { %2199 = vmatprep.subr.bf16.mxu0 %v2653_v0 }
 0x5ba   :  { %2200 = vmatpush3.bf16.msra.mxu0 %v2494_v21 }
 0x5bb   :  { %2201 = vmatprep.subr.bf16.mxu0 %v2653_v0 }
 0x5be   :  { %2202 = vmatpush3.bf16.msra.mxu0 %v2495_v22 }
 0x674   :  { %v2114_v12 = vpop.f32.mrb[12].mxu0 }
 0x675   :  { %v2115_v14 = vpop.f32.mrb[13].mxu0 }
 0x676   :  { %v2116_v15 = vadd.f32 %v2115_v14, %v2114_v12  ;;  %v2117_v16 = vpop.f32.mrb[14].mxu0 }
 0x677   :  { %v2118_v17 = vpop.f32.mrb[15].mxu0 }
 0x678   :  { %v1527_v18 = vadd.f32 %v2116_v15, %v2045_v13 }
 0x67a   :  { %v1532_v19 = vmax.f32 %v1527_v18, 0.0 }
 0x67c   :  { %v1533_v20 = vpack.c.bf16 %v1532_v19, %v1532_v19 }
 0x67e   :  { %2184 = vmatmul.mubr.bf16.vlgmr.msra.gmra.mrb[12].mxu1 %v1533_v20 }
 0x67f   :  { %2223 = vmatprep.mubr.msk.bf16.mxu1 %vm2654_vm0, %v2653_v0  ;;  %2208 = vmatpush3.bf16.msra.mxu1 %v2496_v23 }
 0x680   :  { %2209 = vmatprep.subr.bf16.mxu1 %v2653_v0 }
 0x683   :  { %2210 = vmatpush3.bf16.msra.mxu1 %v2497_v24 }
 0x684   :  { %2211 = vmatprep.subr.bf16.mxu1 %v2653_v0 }
 0x687   :  { %2212 = vmatpush3.bf16.msra.mxu1 %v2498_v25 }
 0x688   :  { %2213 = vmatprep.subr.bf16.mxu1 %v2653_v0 }
 0x68b   :  { %2214 = vmatpush3.bf16.msra.mxu1 %v2499_v26 }
 0x68c   :  { %2215 = vmatprep.subr.bf16.mxu1 %v2653_v0 }
 0x68f   :  { %2216 = vmatpush3.bf16.msra.mxu1 %v2500_v27 }
 0x690   :  { %2217 = vmatprep.subr.bf16.mxu1 %v2653_v0 }
 0x693   :  { %2218 = vmatpush3.bf16.msra.mxu1 %v2501_v28 }
 0x694   :  { %2219 = vmatprep.subr.bf16.mxu1 %v2653_v0 }
 0x697   :  { %2220 = vmatpush3.bf16.msra.mxu1 %v2502_v39 }
 0x698   :  { %2221 = vmatprep.subr.bf16.mxu1 %v2653_v0 }
 0x69b   :  { %2222 = vmatpush3.bf16.msra.mxu1 %v2503_v40 }
 0x751   :  { %v1640_v30 = vpop.f32.mrb[12].mxu1 }
 0x752   :  { %v1641_v31 = vadd.f32 %v2062_v29, %v1640_v30  ;;  %v2185_v32 = vpop.f32.mrb[13].mxu1 }
 0x753   :  { %v1643_v33 = vpop.f32.mrb[14].mxu1 }
 0x754   :  { %v1646_v35 = vmax.f32 %v1641_v31, 0.0  ;;  %v2186_v37 = vpop.f32.mrb[15].mxu1 }
 0x756   :  { %v1647_v38 = vpack.c.bf16 %v1646_v35, %v1646_v35 }
 0x758   :  { %2204 = vmatmul.mubr.bf16.vlgmr.msra.gmra.mrb[16].mxu0 %v1647_v38 }
 0x82b   :  { %v1754_v42 = vpop.f32.mrb[16].mxu0 }
 0x82c   :  { %v1755_v43 = vadd.f32 %v2071_v41, %v1754_v42  ;;  %v2205_v44 = vpop.f32.mrb[17].mxu0 }
 0x82d   :  { %v1757_v45 = vpop.f32.mrb[18].mxu0 }
 0x82e   :  { %v1760_v46 = vmax.f32 %v1755_v43, 0.0  ;;  %v2206_v47 = vpop.f32.mrb[19].mxu0 }
 0x830   :  { %v1761_v48 = vpack.c.bf16 %v1760_v46, %v1760_v46 }
 0x832   :  { %2224 = vmatmul.mubr.bf16.vlgmr.msra.gmra.mrb[16].mxu1 %v1761_v48 }
 0x905   :  { %v1868_v0 = vpop.f32.mrb[16].mxu1 }
 0x906   :  { %v1869_v50 = vadd.f32 %v2080_v49, %v1868_v0  ;;  %v2225_v51 = vpop.f32.mrb[17].mxu1 }
 0x907   :  { %v1871_v52 = vpop.f32.mrb[18].mxu1 }
 0x908   :  { %1874 = vst [vmem:[#allocation11] sm:$0xff] %v1869_v50  ;;  %v2226_v53 = vpop.f32.mrb[19].mxu1 }
 0x909   :  { %2625 = shalt.err (!%p2622_p2)
}
 0x90a   :  { %s2626_s5 = scalar_lea.hbm %s2866_s6, 128 }
 0x90b   :  { %p2627_p3 = scmp.ne.s32.totalorder %s2866_s6, %s2626_s5  ;;  %p2630_p4 = scmp.lt.u32.totalorder %s2626_s5, %s2866_s6 }
 0x90d   :  { %p2632_p5 = pnand %p2630_p4, %p2627_p3 }
 0x90f   :  { %2635 = shalt.err (!%p2632_p5)
}
 0x910   :  { %1884 = dma.vmem_to_hbm [thread:$0]  %s1882_s29, 128, %s2866_s6, [#allocation4]  }
 0x911   :  { %2642 = dma.done.wait [#allocation4], 128  }
 0x912   :  { %2643 = vsyncadd [#allocation4], 4294967168 }
 0x913   :  { %1888 = vsyncpa [#allocation3], 1 }
 0x914   :  { %1889 = vsyncpa [#allocation6], 1 }
 0x915   :  { %1890 = vsyncpa [#allocation9], 1 }
 0x916   :  { %1891 = vsyncpa [#allocation4], 1 }

</bundles_post_ra>
